<compile_context>
chip_gen: v5e
topology: v5e:2x2
jax: 0.10.0
libtpu: 0.0.40
codegen_flags: <defaults>
</compile_context>

<pallas_src>
import jax
import jax.numpy as jnp
from jax.experimental import pallas as pl
from jax.experimental.pallas import tpu as pltpu


def _chroma_loss_kernel(x_ref, g_ref, o_ref):
    # x_ref, g_ref: (Bn, 3, T) float32 blocks (channels on the middle axis)
    # o_ref       : (1, 1) float32 accumulator, resident across the whole grid
    @pl.when(jnp.logical_and(pl.program_id(0) == 0, pl.program_id(1) == 0))
    def _():
        o_ref[...] = jnp.zeros_like(o_ref)

    def uv(block):
        r = block[:, 0, :]
        g = block[:, 1, :]
        b = block[:, 2, :]
        x = 0.4124 * r + 0.2127 * g + 0.0193 * b
        y = 0.3576 * r + 0.7152 * g + 0.1192 * b
        z = 0.1805 * r + 0.0722 * g + 0.9504 * b
        a = x + 15.0 * y + 3.0 * z + 1e-6
        # Same op ordering as the reference (exact divide, then scale).
        u = (4.0 * x / a) * (410.0 / 255.0)
        v = (9.0 * y / a) * (410.0 / 255.0)
        return u, v

    u_o, v_o = uv(x_ref[...])
    u_g, v_g = uv(g_ref[...])
    block_loss = 0.5 * (jnp.abs(u_o - u_g) + jnp.abs(v_o - v_g))
    o_ref[...] = o_ref[...] + jnp.sum(block_loss)


def _choose_tiles(N, P):
    """Pick (Bn, T, Ppad): batch slices per block, lane-tile, padded pixel count."""
    LANE = 128
    T_CAP = 32768  # 32k lanes * 4 B * 3 ch = 384 KiB per input block

    Ppad = ((P + LANE - 1) // LANE) * LANE
    T = min(Ppad, T_CAP)
    Ppad = ((Ppad + T - 1) // T) * T  # make T divide Ppad exactly

    # Keep (2 inputs x 3 ch x T x f32) per batch-slice within a ~4 MiB budget
    # (x2 for double buffering stays well inside every generation's scoped VMEM).
    per_slice_bytes = 2 * 3 * T * 4
    bn_cap = max(1, (4 * 1024 * 1024) // per_slice_bytes)
    Bn = 1
    for d in range(min(N, bn_cap), 0, -1):
        if N % d == 0:
            Bn = d
            break
    return Bn, T, Ppad


def chroma_loss(output, gt):
    """output, gt: (N, C>=3, H, W) arrays -> scalar Chroma_Funcv3 loss."""
    N, C, H, W = output.shape
    P = H * W
    Bn, T, Ppad = _choose_tiles(N, P)

    def prep(x):
        x = x[:, :3].astype(jnp.float32).reshape(N, 3, P)  # reshape is free (contiguous)
        if Ppad != P:
            # Zero pixels give u = v = 0 for both inputs -> zero loss contribution.
            x = jnp.pad(x, ((0, 0), (0, 0), (0, Ppad - P)))
        return x

    xo = prep(output)
    xg = prep(gt)

    out = pl.pallas_call(
        _chroma_loss_kernel,
        out_shape=jax.ShapeDtypeStruct((1, 1), jnp.float32),
        grid_spec=pltpu.PrefetchScalarGridSpec(
            num_scalar_prefetch=0,
            grid=(N // Bn, Ppad // T),
            in_specs=[
                pl.BlockSpec((Bn, 3, T), lambda i, j: (i, 0, j)),
                pl.BlockSpec((Bn, 3, T), lambda i, j: (i, 0, j)),
            ],
            out_specs=pl.BlockSpec((1, 1), lambda i, j: (0, 0)),
        ),
        compiler_params=pltpu.CompilerParams(
            dimension_semantics=("arbitrary", "arbitrary")),
    )(xo, xg)

    # Mean over the (N, H, W) loss map.
    return out[0, 0] / (N * H * W)


# ----------------------- plain-JAX reference -----------------------
def _rgb2uv_ref(E, flag):
    R, G, B = E[:, 0], E[:, 1], E[:, 2]
    X = 0.4124 * R + 0.2127 * G + 0.0193 * B
    Y = 0.3576 * R + 0.7152 * G + 0.1192 * B
    Z = 0.1805 * R + 0.0722 * G + 0.9504 * B
    A = X + 15.0 * Y + 3.0 * Z + 1e-6
    out = 4.0 * X / A if flag == 1 else 9.0 * Y / A
    return out * 410.0 / 255.0


def _reference(output, gt):
    loss = 0.5 * (jnp.abs(_rgb2uv_ref(output, 1) - _rgb2uv_ref(gt, 1))
                  + jnp.abs(_rgb2uv_ref(output, -1) - _rgb2uv_ref(gt, -1)))
    return jnp.mean(loss)


if __name__ == "__main__":
    key = jax.random.PRNGKey(0)
    k1, k2 = jax.random.split(key)
    N, C, H, W = 2, 3, 16, 16
    out_img = jax.random.uniform(k1, (N, C, H, W), dtype=jnp.float32)
    gt_img = jax.random.uniform(k2, (N, C, H, W), dtype=jnp.float32)

    loss = chroma_loss(out_img, gt_img)
    loss = jax.block_until_ready(loss)

    ref = _reference(out_img, gt_img)
    assert loss.shape == ()
    assert jnp.allclose(loss, ref, atol=1e-5, rtol=1e-5), (loss, ref)
    print("KERNEL_OK")
</pallas_src>

<mosaic_0001>
module attributes {stable_mosaic.version = 11 : i64} {
  func.func @_chroma_loss_kernel(%arg0: i32, %arg1: i32, %arg2: memref<2x3x256xf32, #tpu.memory_space<vmem>>, %arg3: memref<2x3x256xf32, #tpu.memory_space<vmem>>, %arg4: memref<1x1xf32, #tpu.memory_space<vmem>>) attributes {dimension_semantics = [#tpu.dimension_semantics<arbitrary>, #tpu.dimension_semantics<arbitrary>], iteration_bounds = array<i64: 1, 1>, scalar_prefetch = 0 : i64, scratch_operands = 0 : i64, tpu.core_type = #tpu.core_type<tc>, window_params = [{transform_indices = @transform_0, window_bounds = array<i64: 2, 3, 256>}, {transform_indices = @transform_1, window_bounds = array<i64: 2, 3, 256>}, {pipeline_mode = #tpu.pipeline_mode<synchronous>, transform_indices = @transform_2, window_bounds = array<i64: 1, 1>}]} {
    %c0_i32 = arith.constant 0 : i32
    %0 = arith.cmpi eq, %arg0, %c0_i32 : i32
    %c0_i32_0 = arith.constant 0 : i32
    %1 = arith.cmpi eq, %arg1, %c0_i32_0 : i32
    %2 = arith.andi %0, %1 : i1
    %3 = arith.extui %2 : i1 to i32
    %c0_i32_1 = arith.constant 0 : i32
    %4 = arith.cmpi ne, %3, %c0_i32_1 : i32
    scf.if %4 {
      %cst_44 = arith.constant 0.000000e+00 : f32
      %118 = vector.broadcast %cst_44 : f32 to vector<1x1xf32>
      %c0_45 = arith.constant 0 : index
      %c0_46 = arith.constant 0 : index
      %119 = vector.load %arg4[%c0_45, %c0_46] : memref<1x1xf32, #tpu.memory_space<vmem>>, vector<1x1xf32>
      tpu.vector_store %arg4[%c0_45, %c0_46], %118 {strides = array<i32>} : memref<1x1xf32, #tpu.memory_space<vmem>>, vector<1x1xf32>,
    } else {
    }
    %c0 = arith.constant 0 : index
    %c0_2 = arith.constant 0 : index
    %c0_3 = arith.constant 0 : index
    %5 = vector.load %arg2[%c0, %c0_2, %c0_3] : memref<2x3x256xf32, #tpu.memory_space<vmem>>, vector<2x3x256xf32>
    %6 = vector.extract_strided_slice %5 {offsets = [0, 0, 0], sizes = [2, 1, 256], strides = [1, 1, 1]} : vector<2x3x256xf32> to vector<2x1x256xf32>
    %7 = vector.shape_cast %6 : vector<2x1x256xf32> to vector<2x256xf32>
    %8 = vector.extract_strided_slice %5 {offsets = [0, 1, 0], sizes = [2, 1, 256], strides = [1, 1, 1]} : vector<2x3x256xf32> to vector<2x1x256xf32>
    %9 = vector.shape_cast %8 : vector<2x1x256xf32> to vector<2x256xf32>
    %10 = vector.extract_strided_slice %5 {offsets = [0, 2, 0], sizes = [2, 1, 256], strides = [1, 1, 1]} : vector<2x3x256xf32> to vector<2x1x256xf32>
    %11 = vector.shape_cast %10 : vector<2x1x256xf32> to vector<2x256xf32>
    %cst = arith.constant 4.124000e-01 : f32
    %12 = vector.broadcast %cst : f32 to vector<2x256xf32>
    %13 = arith.mulf %12, %7 : vector<2x256xf32>
    %cst_4 = arith.constant 2.127000e-01 : f32
    %14 = vector.broadcast %cst_4 : f32 to vector<2x256xf32>
    %15 = arith.mulf %14, %9 : vector<2x256xf32>
    %16 = arith.addf %13, %15 : vector<2x256xf32>
    %cst_5 = arith.constant 1.930000e-02 : f32
    %17 = vector.broadcast %cst_5 : f32 to vector<2x256xf32>
    %18 = arith.mulf %17, %11 : vector<2x256xf32>
    %19 = arith.addf %16, %18 : vector<2x256xf32>
    %cst_6 = arith.constant 3.576000e-01 : f32
    %20 = vector.broadcast %cst_6 : f32 to vector<2x256xf32>
    %21 = arith.mulf %20, %7 : vector<2x256xf32>
    %cst_7 = arith.constant 7.152000e-01 : f32
    %22 = vector.broadcast %cst_7 : f32 to vector<2x256xf32>
    %23 = arith.mulf %22, %9 : vector<2x256xf32>
    %24 = arith.addf %21, %23 : vector<2x256xf32>
    %cst_8 = arith.constant 1.192000e-01 : f32
    %25 = vector.broadcast %cst_8 : f32 to vector<2x256xf32>
    %26 = arith.mulf %25, %11 : vector<2x256xf32>
    %27 = arith.addf %24, %26 : vector<2x256xf32>
    %cst_9 = arith.constant 1.805000e-01 : f32
    %28 = vector.broadcast %cst_9 : f32 to vector<2x256xf32>
    %29 = arith.mulf %28, %7 : vector<2x256xf32>
    %cst_10 = arith.constant 7.220000e-02 : f32
    %30 = vector.broadcast %cst_10 : f32 to vector<2x256xf32>
    %31 = arith.mulf %30, %9 : vector<2x256xf32>
    %32 = arith.addf %29, %31 : vector<2x256xf32>
    %cst_11 = arith.constant 0.950399994 : f32
    %33 = vector.broadcast %cst_11 : f32 to vector<2x256xf32>
    %34 = arith.mulf %33, %11 : vector<2x256xf32>
    %35 = arith.addf %32, %34 : vector<2x256xf32>
    %cst_12 = arith.constant 1.500000e+01 : f32
    %36 = vector.broadcast %cst_12 : f32 to vector<2x256xf32>
    %37 = arith.mulf %36, %27 : vector<2x256xf32>
    %38 = arith.addf %19, %37 : vector<2x256xf32>
    %cst_13 = arith.constant 3.000000e+00 : f32
    %39 = vector.broadcast %cst_13 : f32 to vector<2x256xf32>
    %40 = arith.mulf %39, %35 : vector<2x256xf32>
    %41 = arith.addf %38, %40 : vector<2x256xf32>
    %cst_14 = arith.constant 9.99999997E-7 : f32
    %42 = vector.broadcast %cst_14 : f32 to vector<2x256xf32>
    %43 = arith.addf %41, %42 : vector<2x256xf32>
    %cst_15 = arith.constant 4.000000e+00 : f32
    %44 = vector.broadcast %cst_15 : f32 to vector<2x256xf32>
    %45 = arith.mulf %44, %19 : vector<2x256xf32>
    %46 = arith.divf %45, %43 : vector<2x256xf32>
    %cst_16 = arith.constant 1.60784316 : f32
    %47 = vector.broadcast %cst_16 : f32 to vector<2x256xf32>
    %48 = arith.mulf %46, %47 : vector<2x256xf32>
    %cst_17 = arith.constant 9.000000e+00 : f32
    %49 = vector.broadcast %cst_17 : f32 to vector<2x256xf32>
    %50 = arith.mulf %49, %27 : vector<2x256xf32>
    %51 = arith.divf %50, %43 : vector<2x256xf32>
    %cst_18 = arith.constant 1.60784316 : f32
    %52 = vector.broadcast %cst_18 : f32 to vector<2x256xf32>
    %53 = arith.mulf %51, %52 : vector<2x256xf32>
    %c0_19 = arith.constant 0 : index
    %c0_20 = arith.constant 0 : index
    %c0_21 = arith.constant 0 : index
    %54 = vector.load %arg3[%c0_19, %c0_20, %c0_21] : memref<2x3x256xf32, #tpu.memory_space<vmem>>, vector<2x3x256xf32>
    %55 = vector.extract_strided_slice %54 {offsets = [0, 0, 0], sizes = [2, 1, 256], strides = [1, 1, 1]} : vector<2x3x256xf32> to vector<2x1x256xf32>
    %56 = vector.shape_cast %55 : vector<2x1x256xf32> to vector<2x256xf32>
    %57 = vector.extract_strided_slice %54 {offsets = [0, 1, 0], sizes = [2, 1, 256], strides = [1, 1, 1]} : vector<2x3x256xf32> to vector<2x1x256xf32>
    %58 = vector.shape_cast %57 : vector<2x1x256xf32> to vector<2x256xf32>
    %59 = vector.extract_strided_slice %54 {offsets = [0, 2, 0], sizes = [2, 1, 256], strides = [1, 1, 1]} : vector<2x3x256xf32> to vector<2x1x256xf32>
    %60 = vector.shape_cast %59 : vector<2x1x256xf32> to vector<2x256xf32>
    %cst_22 = arith.constant 4.124000e-01 : f32
    %61 = vector.broadcast %cst_22 : f32 to vector<2x256xf32>
    %62 = arith.mulf %61, %56 : vector<2x256xf32>
    %cst_23 = arith.constant 2.127000e-01 : f32
    %63 = vector.broadcast %cst_23 : f32 to vector<2x256xf32>
    %64 = arith.mulf %63, %58 : vector<2x256xf32>
    %65 = arith.addf %62, %64 : vector<2x256xf32>
    %cst_24 = arith.constant 1.930000e-02 : f32
    %66 = vector.broadcast %cst_24 : f32 to vector<2x256xf32>
    %67 = arith.mulf %66, %60 : vector<2x256xf32>
    %68 = arith.addf %65, %67 : vector<2x256xf32>
    %cst_25 = arith.constant 3.576000e-01 : f32
    %69 = vector.broadcast %cst_25 : f32 to vector<2x256xf32>
    %70 = arith.mulf %69, %56 : vector<2x256xf32>
    %cst_26 = arith.constant 7.152000e-01 : f32
    %71 = vector.broadcast %cst_26 : f32 to vector<2x256xf32>
    %72 = arith.mulf %71, %58 : vector<2x256xf32>
    %73 = arith.addf %70, %72 : vector<2x256xf32>
    %cst_27 = arith.constant 1.192000e-01 : f32
    %74 = vector.broadcast %cst_27 : f32 to vector<2x256xf32>
    %75 = arith.mulf %74, %60 : vector<2x256xf32>
    %76 = arith.addf %73, %75 : vector<2x256xf32>
    %cst_28 = arith.constant 1.805000e-01 : f32
    %77 = vector.broadcast %cst_28 : f32 to vector<2x256xf32>
    %78 = arith.mulf %77, %56 : vector<2x256xf32>
    %cst_29 = arith.constant 7.220000e-02 : f32
    %79 = vector.broadcast %cst_29 : f32 to vector<2x256xf32>
    %80 = arith.mulf %79, %58 : vector<2x256xf32>
    %81 = arith.addf %78, %80 : vector<2x256xf32>
    %cst_30 = arith.constant 0.950399994 : f32
    %82 = vector.broadcast %cst_30 : f32 to vector<2x256xf32>
    %83 = arith.mulf %82, %60 : vector<2x256xf32>
    %84 = arith.addf %81, %83 : vector<2x256xf32>
    %cst_31 = arith.constant 1.500000e+01 : f32
    %85 = vector.broadcast %cst_31 : f32 to vector<2x256xf32>
    %86 = arith.mulf %85, %76 : vector<2x256xf32>
    %87 = arith.addf %68, %86 : vector<2x256xf32>
    %cst_32 = arith.constant 3.000000e+00 : f32
    %88 = vector.broadcast %cst_32 : f32 to vector<2x256xf32>
    %89 = arith.mulf %88, %84 : vector<2x256xf32>
    %90 = arith.addf %87, %89 : vector<2x256xf32>
    %cst_33 = arith.constant 9.99999997E-7 : f32
    %91 = vector.broadcast %cst_33 : f32 to vector<2x256xf32>
    %92 = arith.addf %90, %91 : vector<2x256xf32>
    %cst_34 = arith.constant 4.000000e+00 : f32
    %93 = vector.broadcast %cst_34 : f32 to vector<2x256xf32>
    %94 = arith.mulf %93, %68 : vector<2x256xf32>
    %95 = arith.divf %94, %92 : vector<2x256xf32>
    %cst_35 = arith.constant 1.60784316 : f32
    %96 = vector.broadcast %cst_35 : f32 to vector<2x256xf32>
    %97 = arith.mulf %95, %96 : vector<2x256xf32>
    %cst_36 = arith.constant 9.000000e+00 : f32
    %98 = vector.broadcast %cst_36 : f32 to vector<2x256xf32>
    %99 = arith.mulf %98, %76 : vector<2x256xf32>
    %100 = arith.divf %99, %92 : vector<2x256xf32>
    %cst_37 = arith.constant 1.60784316 : f32
    %101 = vector.broadcast %cst_37 : f32 to vector<2x256xf32>
    %102 = arith.mulf %100, %101 : vector<2x256xf32>
    %103 = arith.subf %48, %97 : vector<2x256xf32>
    %104 = math.absf %103 : vector<2x256xf32>
    %105 = arith.subf %53, %102 : vector<2x256xf32>
    %106 = math.absf %105 : vector<2x256xf32>
    %107 = arith.addf %104, %106 : vector<2x256xf32>
    %cst_38 = arith.constant 5.000000e-01 : f32
    %108 = vector.broadcast %cst_38 : f32 to vector<2x256xf32>
    %109 = arith.mulf %108, %107 : vector<2x256xf32>
    %c0_39 = arith.constant 0 : index
    %c0_40 = arith.constant 0 : index
    %110 = vector.load %arg4[%c0_39, %c0_40] : memref<1x1xf32, #tpu.memory_space<vmem>>, vector<1x1xf32>
    %111 = vector.shape_cast %109 : vector<2x256xf32> to vector<1x2x256xf32>
    %cst_41 = arith.constant dense<0.000000e+00> : vector<1xf32>
    %112 = vector.multi_reduction <add>, %111, %cst_41 [1, 2] : vector<1x2x256xf32> to vector<1xf32>
    %113 = vector.shape_cast %112 : vector<1xf32> to vector<1x1x1xf32>
    %114 = vector.extract %113[0, 0, 0] : f32 from vector<1x1x1xf32>
    %115 = vector.broadcast %114 : f32 to vector<1x1xf32>
    %116 = arith.addf %110, %115 : vector<1x1xf32>
    %c0_42 = arith.constant 0 : index
    %c0_43 = arith.constant 0 : index
    %117 = vector.load %arg4[%c0_42, %c0_43] : memref<1x1xf32, #tpu.memory_space<vmem>>, vector<1x1xf32>
    tpu.vector_store %arg4[%c0_42, %c0_43], %116 {strides = array<i32>} : memref<1x1xf32, #tpu.memory_space<vmem>>, vector<1x1xf32>,
    return
  }
  func.func @transform_0(%arg0: i32, %arg1: i32) -> (i32, i32, i32) {
    %c0_i32 = arith.constant 0 : i32
    %c0_i32_0 = arith.constant 0 : i32
    return %arg0, %c0_i32, %arg1 : i32, i32, i32
  }
  func.func @transform_1(%arg0: i32, %arg1: i32) -> (i32, i32, i32) {
    %c0_i32 = arith.constant 0 : i32
    %c0_i32_0 = arith.constant 0 : i32
    return %arg0, %c0_i32, %arg1 : i32, i32, i32
  }
  func.func @transform_2(%arg0: i32, %arg1: i32) -> (i32, i32) {
    %c0_i32 = arith.constant 0 : i32
    %c0_i32_0 = arith.constant 0 : i32
    %c0_i32_1 = arith.constant 0 : i32
    return %c0_i32, %c0_i32_0 : i32, i32
  }
}

</mosaic_0001>

<bundles_post_ra>
// kernel: tpu_custom_call.1
= control target key start
LH: loop header
LB: loop body
LE: loop exit
PB: predicated region body
PF: predicated region fallthrough
CT: control target
= control target key end

     0   :  { %s499_s0 = inlined_call_operand.vmem [shape: f32[2,3,256], index: 0, kind: input, shape index: {}]   ;;  %s500_s1 = inlined_call_operand.vmem [shape: f32[2,3,256], index: 1, kind: input, shape index: {}]   ;;  %s501_s2 = inlined_call_operand.hbm [shape: f32[1,1], index: 2, kind: output, shape index: {}]  }
   0x1   :  { %v20_v0 = vld [vmem:[%s499_s0] sm:$0x77]  ;;  %v21_v1 = vld [vmem:[%s499_s0 + $0x8] sm:$0x77] }
   0x2   :  { %v22_v2 = vmul.f32 0.4124, %v20_v0  ;;  %v23_v3 = vmul.f32 0.4124, %v21_v1  ;;  %v24_v4 = vmul.f32 0.2127, %v20_v0 }
   0x3   :  { %v25_v5 = vmul.f32 0.2127, %v21_v1  ;;  %v36_v6 = vmul.f32 0.0193, %v20_v0  ;;  %v37_v7 = vmul.f32 0.0193, %v21_v1 }
   0x4   :  { %v337_v8 = vrot.slane %v24_v4, 9  ;;  %v48_v9 = vmul.f32 0.3576, %v20_v0  ;;  %v49_v10 = vmul.f32 0.3576, %v21_v1 }
   0x5   :  { %v338_v11 = vrot.slane %v25_v5, 9  ;;  %v339_v12 = vrot.slane %v36_v6, 10  ;;  %v340_v13 = vrot.slane %v37_v7, 10  ;;  %v50_v14 = vmul.f32 0.7152, %v20_v0 }
   0x6   :  { %v51_v15 = vmul.f32 0.7152, %v21_v1  ;;  %v62_v16 = vmul.f32 0.1192, %v20_v0  ;;  %v63_v17 = vmul.f32 0.1192, %v21_v1  ;;  %v34_v18 = vadd.f32 %v337_v8, %v22_v2 }
   0x7   :  { %v35_v19 = vadd.f32 %v338_v11, %v23_v3  ;;  %v341_v20 = vrot.slane %v50_v14, 9  ;;  %v74_v21 = vmul.f32 0.1805, %v20_v0  ;;  %v75_v25 = vmul.f32 0.1805, %v21_v1 }
   0x8   :  { %v342_v22 = vrot.slane %v51_v15, 9  ;;  %v343_v23 = vrot.slane %v62_v16, 10  ;;  %v344_v24 = vrot.slane %v63_v17, 10  ;;  %v76_v27 = vmul.f32 0.0722, %v20_v0 }
   0x9   :  { %v60_v26 = vadd.f32 %v341_v20, %v48_v9  ;;  %v77_v28 = vmul.f32 0.0722, %v21_v1 }
   0xa   :  { %7 = vsyncpa [#allocation3], 0  ;;  %v61_v29 = vadd.f32 %v342_v22, %v49_v10  ;;  %v88_v30 = vmul.f32 0.9504, %v20_v0  ;;  %v89_v31 = vmul.f32 0.9504, %v21_v1  ;;  %v422_v32 = vadd.f32 %v339_v12, %v34_v18 }
   0xb   :  { %v424_v33 = vadd.f32 %v343_v23, %v60_v26  ;;  %v345_v34 = vrot.slane %v76_v27, 9  ;;  %v346_v35 = vrot.slane %v77_v28, 9  ;;  %v426_v36 = vadd.f32 %v340_v13, %v35_v19  ;;  %v150_v43 = vld [vmem:[%s500_s1] sm:$0x77]  ;;  %v151_v45 = vld [vmem:[%s500_s1 + $0x8] sm:$0x77] }
   0xc   :  { %v428_v37 = vadd.f32 %v344_v24, %v61_v29  ;;  %v347_v38 = vrot.slane %v88_v30, 10  ;;  %v348_v39 = vrot.slane %v89_v31, 10  ;;  %v154_v46 = vmul.f32 0.2127, %v150_v43  ;;  %s400_s1 = smov [#allocation2]   ;;  %s328_s19 = sshll.u32 %s501_s2, 4  ;;  %s329_s19 = int_to_ptr.hbm [resolvable:$true] %s328_s19 }
   0xd   :  { %v86_v40 = vadd.f32 %v345_v34, %v74_v21  ;;  %v87_v41 = vadd.f32 %v346_v35, %v75_v25  ;;  %v100_v42 = vmul.f32 15.0, %v424_v33  ;;  %v155_v50 = vmul.f32 0.2127, %v151_v45  ;;  %s326_s16 = sshll.u32 %s400_s1, 4  ;;  %s327_s16 = int_to_ptr.vmem [resolvable:$true] %s326_s16 }
   0xe   :  { %v101_v44 = vmul.f32 15.0, %v428_v37  ;;  %v152_v52 = vmul.f32 0.4124, %v150_v43  ;;  %v153_v55 = vmul.f32 0.4124, %v151_v45  ;;  %v349_v57 = vrot.slane %v154_v46, 9 }
   0xf   :  { %v98_v47 = vadd.f32 %v347_v38, %v86_v40  ;;  %v99_v48 = vadd.f32 %v348_v39, %v87_v41  ;;  %v102_v49 = vadd.f32 %v100_v42, %v422_v32  ;;  %v166_v56 = vmul.f32 0.0193, %v150_v43 }
  0x10   :  { %v103_v51 = vadd.f32 %v101_v44, %v426_v36  ;;  %v350_v58 = vrot.slane %v155_v50, 9  ;;  %v167_v59 = vmul.f32 0.0193, %v151_v45  ;;  %v178_v60 = vmul.f32 0.3576, %v150_v43 }
  0x11   :  { %v104_v53 = vmul.f32 3.0, %v98_v47  ;;  %v105_v54 = vmul.f32 3.0, %v99_v48  ;;  %v179_v63 = vmul.f32 0.3576, %v151_v45  ;;  %v180_v0 = vmul.f32 0.7152, %v150_v43 }
  0x12   :  { %v181_v1 = vmul.f32 0.7152, %v151_v45  ;;  %v192_v2 = vmul.f32 0.1192, %v150_v43  ;;  %v193_v3 = vmul.f32 0.1192, %v151_v45  ;;  %v164_v8 = vadd.f32 %v349_v57, %v152_v52 }
  0x13   :  { %v106_v61 = vadd.f32 %v104_v53, %v102_v49  ;;  %v107_v62 = vadd.f32 %v105_v54, %v103_v51  ;;  %v353_v6 = vrot.slane %v180_v0, 9  ;;  %v165_v11 = vadd.f32 %v350_v58, %v153_v55 }
  0x14   :  { %v354_v7 = vrot.slane %v181_v1, 9  ;;  %v355_v9 = vrot.slane %v192_v2, 10  ;;  %v356_v10 = vrot.slane %v193_v3, 10  ;;  %v351_v12 = vrot.slane %v166_v56, 10 }
  0x15   :  { %v440_v4 = vadd.f32 1e-06, %v106_v61  ;;  %v442_v5 = vadd.f32 1e-06, %v107_v62  ;;  %v352_v13 = vrot.slane %v167_v59, 10  ;;  %v190_v14 = vadd.f32 %v353_v6, %v178_v60 }
  0x16   :  { %v191_v15 = vadd.f32 %v354_v7, %v179_v63  ;;  %v204_v16 = vmul.f32 0.1805, %v150_v43  ;;  %v205_v17 = vmul.f32 0.1805, %v151_v45  ;;  %v206_v18 = vmul.f32 0.0722, %v150_v43 }
  0x17   :  { %365 = vrcp.f32 %v440_v4  ;;  %v446_v19 = vadd.f32 %v355_v9, %v190_v14  ;;  %v207_v21 = vmul.f32 0.0722, %v151_v45  ;;  %v218_v22 = vmul.f32 0.9504, %v150_v43 }
  0x18   :  { %367 = vrcp.f32 %v442_v5  ;;  %v448_v20 = vadd.f32 %v356_v10, %v191_v15  ;;  %v450_v23 = vadd.f32 %v351_v12, %v164_v8  ;;  %v452_v24 = vadd.f32 %v352_v13, %v165_v11 }
  0x19   :  { %v357_v25 = vrot.slane %v206_v18, 9  ;;  %v219_v26 = vmul.f32 0.9504, %v151_v45  ;;  %v358_v28 = vrot.slane %v207_v21, 9  ;;  %v359_v29 = vrot.slane %v218_v22, 10 }
  0x1a   :  { %v230_v30 = vmul.f32 15.0, %v446_v19  ;;  %v231_v31 = vmul.f32 15.0, %v448_v20  ;;  %vm117_vm0 = vweird.f32 %v440_v4  ;;  %v123_v56 = vand.u32 2147483648, %v440_v4 }
  0x1b   :  { %v216_v38 = vadd.f32 %v357_v25, %v204_v16  ;;  %v360_v39 = vrot.slane %v219_v26, 10  ;;  %v217_v41 = vadd.f32 %v358_v28, %v205_v17  ;;  %v121_v58 = vand.u32 2147483647, %v440_v4 }
  0x1c   :  { %v232_v43 = vadd.f32 %v230_v30, %v450_v23  ;;  %v233_v46 = vadd.f32 %v231_v31, %v452_v24  ;;  %vm132_vm2 = vweird.f32 %v442_v5  ;;  %v138_v60 = vand.u32 2147483648, %v442_v5 }
  0x1d   :  { %v366_v27 = vpop.eup %365  ;;  %v228_v42 = vadd.f32 %v359_v29, %v216_v38  ;;  %v229_v45 = vadd.f32 %v360_v39, %v217_v41  ;;  %v136_v62 = vand.u32 2147483647, %v442_v5  ;;  %v124_v63 = vor.u32 1.1754944e-38, %v123_v56 }
  0x1e   :  { %v368_v34 = vpop.eup %367  ;;  %v113_v35 = vmul.f32 %v366_v27, %v440_v4  ;;  %vm118_vm1 = vweird.f32 %v366_v27  ;;  %vm122_vm6 = vcmp.eq.f32.partialorder %v121_v58, 8.507059e+37  ;;  %v110_v3 = vmul.f32 4.0, %v422_v32 }
  0x1f   :  { %v128_v40 = vmul.f32 %v368_v34, %v442_v5  ;;  %v234_v47 = vmul.f32 3.0, %v228_v42  ;;  %v235_v49 = vmul.f32 3.0, %v229_v45  ;;  %vm133_vm3 = vweird.f32 %v368_v34  ;;  %vm464_vm4 = vmor %vm117_vm0, %vm118_vm1 }
  0x20   :  { %v114_v44 = vsub.f32 1.0, %v113_v35  ;;  %vm470_vm5 = vmor %vm132_vm2, %vm133_vm3  ;;  %v139_v4 = vor.u32 1.1754944e-38, %v138_v60  ;;  %v111_v6 = vmul.f32 4.0, %v426_v36  ;;  %vm137_vm7 = vcmp.eq.f32.partialorder %v136_v62, 8.507059e+37 }
  0x21   :  { %v129_v48 = vsub.f32 1.0, %v128_v40  ;;  %v236_v50 = vadd.f32 %v234_v47, %v232_v43  ;;  %v237_v52 = vadd.f32 %v235_v49, %v233_v46  ;;  %v144_v10 = vmul.f32 9.0, %v424_v33 }
  0x22   :  { %v115_v51 = vmul.f32 %v366_v27, %v114_v44  ;;  %v145_v32 = vmul.f32 9.0, %v428_v37  ;;  %v240_v22 = vmul.f32 4.0, %v450_v23  ;;  %v274_v26 = vmul.f32 9.0, %v446_v19 }
  0x23   :  { %v238_v53 = vadd.f32 1e-06, %v236_v50  ;;  %v130_v54 = vmul.f32 %v368_v34, %v129_v48  ;;  %v239_v55 = vadd.f32 1e-06, %v237_v52  ;;  %v241_v31 = vmul.f32 4.0, %v452_v24 }
  0x24   :  { %v116_v57 = vadd.f32 %v366_v27, %v115_v51  ;;  %v275_v38 = vmul.f32 9.0, %v448_v20  ;;  %vm299_vm0 = vcmask 1041409   ;;  %vm304_vm1 = vcmask 1041408  }
  0x25   :  { %369 = vrcp.f32 %v238_v53  ;;  %v131_v61 = vadd.f32 %v368_v34, %v130_v54  ;;  %vm247_vm8 = vweird.f32 %v238_v53  ;;  %v253_v11 = vand.u32 2147483648, %v238_v53 }
  0x26   :  { %371 = vrcp.f32 %v239_v55  ;;  %v120_v1 = vsel %vm464_vm4, %v366_v27, %v116_v57  ;;  %v251_v13 = vand.u32 2147483647, %v238_v53  ;;  %vm262_vm10 = vweird.f32 %v239_v55 }
  0x27   :  { %v135_v7 = vsel %vm470_vm5, %v368_v34, %v131_v61  ;;  %v125_v9 = vsel %vm122_vm6, %v124_v63, %v120_v1  ;;  %v268_v36 = vand.u32 2147483648, %v239_v55  ;;  %v266_v18 = vand.u32 2147483647, %v239_v55 }
  0x28   :  { %v140_v15 = vsel %vm137_vm7, %v139_v4, %v135_v7  ;;  %v126_v21 = vmul.f32 %v125_v9, %v110_v3  ;;  %v254_v25 = vor.u32 1.1754944e-38, %v253_v11  ;;  %v146_v27 = vmul.f32 %v144_v10, %v125_v9 }
  0x29   :  { %vm252_vm13 = vcmp.eq.f32.partialorder %v251_v13, 8.507059e+37  ;;  %v141_v29 = vmul.f32 %v140_v15, %v111_v6  ;;  %v147_v30 = vmul.f32 %v145_v32, %v140_v15  ;;  %v269_v34 = vor.u32 1.1754944e-38, %v268_v36 }
  0x2a   :  { %vm267_vm15 = vcmp.eq.f32.partialorder %v266_v18, 8.507059e+37  ;;  %v142_v39 = vmul.f32 1.6078432, %v126_v21  ;;  %v148_v40 = vmul.f32 1.6078432, %v146_v27  ;;  %vm18_vm2 = vcmask 0  }
  0x2b   :  { %v370_v2 = vpop.eup %369  ;;  %v143_v44 = vmul.f32 1.6078432, %v141_v29  ;;  %v149_v45 = vmul.f32 1.6078432, %v147_v30 }
  0x2c   :  { %v243_v5 = vmul.f32 %v370_v2, %v238_v53  ;;  %v372_v8 = vpop.eup %371  ;;  %vm248_vm9 = vweird.f32 %v370_v2 }
  0x2d   :  { %v258_v14 = vmul.f32 %v372_v8, %v239_v55  ;;  %vm263_vm11 = vweird.f32 %v372_v8  ;;  %vm484_vm12 = vmor %vm247_vm8, %vm248_vm9 }
  0x2e   :  { %v244_v12 = vsub.f32 1.0, %v243_v5  ;;  %vm264_vm14 = vmor %vm262_vm10, %vm263_vm11 }
  0x2f   :  { %v259_v17 = vsub.f32 1.0, %v258_v14 }
  0x30   :  { %v245_v16 = vmul.f32 %v370_v2, %v244_v12 }
  0x31   :  { %v260_v37 = vmul.f32 %v372_v8, %v259_v17 }
  0x32   :  { %v246_v28 = vadd.f32 %v370_v2, %v245_v16 }
  0x33   :  { %v261_v35 = vadd.f32 %v372_v8, %v260_v37 }
  0x34   :  { %v250_v23 = vsel %vm484_vm12, %v370_v2, %v246_v28 }
  0x35   :  { %v255_v19 = vsel %vm252_vm13, %v254_v25, %v250_v23  ;;  %v265_v42 = vsel %vm264_vm14, %v372_v8, %v261_v35  ;;  %v399_v8 = vmov 0.0  }
  0x36   :  { %v256_v41 = vmul.f32 %v255_v19, %v240_v22  ;;  %v276_v43 = vmul.f32 %v274_v26, %v255_v19  ;;  %v270_v46 = vsel %vm267_vm15, %v269_v34, %v265_v42  ;;  %19 = vst.msk [vmem:[#allocation2] sm:$0x1] %vm18_vm2, %v399_v8 }
  0x37   :  { %v271_v24 = vmul.f32 %v270_v46, %v241_v31  ;;  %v277_v48 = vmul.f32 %v275_v38, %v270_v46 }
  0x38   :  { %v272_v47 = vmul.f32 1.6078432, %v256_v41  ;;  %v278_v49 = vmul.f32 1.6078432, %v276_v43 }
  0x39   :  { %v273_v50 = vmul.f32 1.6078432, %v271_v24  ;;  %v279_v51 = vmul.f32 1.6078432, %v277_v48 }
  0x3a   :  { %v280_v52 = vsub.f32 %v142_v39, %v272_v47  ;;  %v284_v53 = vsub.f32 %v148_v40, %v278_v49 }
  0x3b   :  { %v281_v54 = vsub.f32 %v143_v44, %v273_v50  ;;  %v285_v20 = vsub.f32 %v149_v45, %v279_v51 }
  0x3c   :  { %v282_v55 = vand.u32 2147483647, %v280_v52  ;;  %v286_v56 = vand.u32 2147483647, %v284_v53 }
  0x3d   :  { %v283_v57 = vand.u32 2147483647, %v281_v54  ;;  %v287_v58 = vand.u32 2147483647, %v285_v20  ;;  %v292_v32 = vld [vmem:[#allocation2] sm:$0x1] }
  0x3e   :  { %v288_v59 = vadd.f32 %v286_v56, %v282_v55 }
  0x3f   :  { %v289_v60 = vadd.f32 %v287_v58, %v283_v57 }
  0x40   :  { %v290_v61 = vmul.f32 0.5, %v288_v59 }
  0x41   :  { %v291_v62 = vmul.f32 0.5, %v289_v60 }
  0x42   :  { %v295_v63 = vperm.slane %v290_v61, 0  ;;  %v296_v0 = vperm.slane %v290_v61, 4 }
  0x43   :  { %v297_v1 = vperm.slane %v291_v62, 0  ;;  %v298_v2 = vperm.slane %v291_v62, 4 }
  0x45   :  { %v300_v3 = vsel %vm299_vm0, %v297_v1, %v295_v63  ;;  %v301_v4 = vsel %vm299_vm0, %v298_v2, %v296_v0 }
  0x46   :  { %v305_v6 = vsel %vm304_vm1, %v300_v3, 0.0  ;;  %v306_v7 = vsel %vm304_vm1, %v301_v4, 0.0 }
  0x47   :  { %v307_v5 = vadd.f32 %v306_v7, %v305_v6 }
  0x49   :  { %308 = vadd.xlane.f32.xlu0 %v307_v5 }
  0xbc   :  { %v309_v9 = vpop.xlane.xlu0 %308 }
  0xbd   :  { %v310_v10 = vrot.slane %v309_v9, 4 }
  0xbf   :  { %v311_v11 = vadd.f32 %v310_v10, %v309_v9 }
  0xc1   :  { %v312_v12 = vrot.slane %v311_v11, 2 }
  0xc3   :  { %v313_v13 = vadd.f32 %v312_v12, %v311_v11 }
  0xc5   :  { %v314_v14 = vrot.slane %v313_v13, 1 }
  0xc7   :  { %v315_v15 = vadd.f32 %v314_v14, %v313_v13 }
  0xc9   :  { %361 = vpush %v315_v15 }
  0xfa   :  { %s362_s20 = spop %361 }
  0xfb   :  { %v317_v36 = vstv %s362_s20 }
  0xfc   :  { %v318_v16 = vadd.f32 %v317_v36, %v292_v32 }
  0xfe   :  { %320 = vst.msk [vmem:[#allocation2] sm:$0x1] %vm18_vm2, %v318_v16 }
  0xff   :  { %331 = dma.vmem_to_hbm [thread:$0]  %s327_s16, 16, %s329_s19, [#allocation3]  }
 0x100   :  { %397 = dma.done.wait [#allocation3], 16  }
 0x101   :  { %398 = vsyncadd [#allocation3], 4294967280 }
 0x102   :  { %336 = vsyncpa [#allocation3], 1 }

</bundles_post_ra>
